<compile_context>
chip_gen: v7x
topology: tpu7x:2x2x1
jax: 0.10.0
libtpu: 0.0.40
codegen_flags: <defaults>
</compile_context>

<pallas_src>
import functools

import jax
import jax.numpy as jnp
from jax import lax
from jax.experimental import pallas as pl
from jax.experimental.pallas import tpu as pltpu

LANE = 128
SUBLANE = 8
NEG = -1.0e30          # additive mask sentinel (representable in bf16's f32-range exponent)


def _round_up(x, m):
    return ((x + m - 1) // m) * m


def _pad2d(a, rows, cols):
    r, c = a.shape
    return jnp.pad(a, ((0, rows - r), (0, cols - c)))


# ------------------------------ fused kernel --------------------------------

def _protein_gat_fused_kernel(
        c_ref,                                  # SMEM [L]   per-layer edge coeff
        x_ref, g_ref,                           # [N,FP] f32, [BP,GP] f32
        nb_ref, es_ref,                         # [N,N] bf16 additive mask bias / edge scalars
        pool_ref,                               # [BP,N] bf16 mean-pool matrix
        emb_w_ref, emb_b_ref,                   # [FP,HP], [1,HP]  f32
        glob_w_ref, glob_b_ref,                 # [GP,HP], [1,HP]  f32
        gw_ref, gas_ref, gad_ref, gb_ref,       # [L,HP,HP] bf16, [L,1,HP] f32 x3
        cwp_ref, cwg_ref, cb_ref,               # [HP,HP], [HP,HP], [1,HP]  f32
        ow_ref, ob_ref,                         # [HP,HP], [1,HP]  f32
        o_ref,                                  # [BP,HP] f32
        *, num_layers):
    f32 = jnp.float32
    bf16 = jnp.bfloat16

    # node / global embeddings (lane-dense 128-wide matmuls; small -> stay f32)
    h = jnp.dot(x_ref[...], emb_w_ref[...], preferred_element_type=f32) + emb_b_ref[...]
    g = jnp.dot(g_ref[...], glob_w_ref[...], preferred_element_type=f32) + glob_b_ref[...]

    # TODO(synk): training-only edge_dropout / F.dropout are identity in eval mode.
    # TODO(synk): lax.fori_loop with dynamic gw_ref[l] indexing once num_layers > ~4.
    for l in range(num_layers):                 # static unroll; num_layers is small
        # projection on the MXU with bf16 operands, f32 accumulation
        hw = jnp.dot(h.astype(bf16), gw_ref[l], preferred_element_type=f32)     # [N,HP]
        # dst attention term: VPU mul + XLU lane reduce (keeps the MXU free)
        a_dst = jnp.sum(hw * gad_ref[l], axis=-1, keepdims=True)                # [N,1]
        # src attention term as one lane-dense [1,N] row (no XLU transpose of a column)
        a_src = lax.dot_general(gas_ref[l], hw, (((1,), (1,)), ((), ())),
                                preferred_element_type=f32)                     # [1,N]
        # logits[i, j] = a_dst[i] + a_src[j] + c_l * edge_scalar[i, j]
        logits = a_dst + a_src + c_ref[l] * es_ref[...].astype(f32)             # [N,N]
        leaky = jnp.maximum(logits, 0.2 * logits)           # leaky_relu(0.2): single vmax
        # additive -1e30 bias instead of per-layer mask selects; exp underflows to 0
        masked = leaky + nb_ref[...].astype(f32)
        rowmax = jnp.max(masked, axis=-1, keepdims=True)
        rowmax = jnp.where(rowmax > 0.5 * NEG, rowmax, 0.0)     # rows with no in-edges
        p = jnp.exp(masked - rowmax)
        denom = jnp.sum(p, axis=-1, keepdims=True)
        # approx reciprocal on the EUP; ~1e-4 rel. error vs exact divide is acceptable here
        inv = pl.reciprocal(jnp.where(denom > 0.0, denom, 1.0), approx=True)
        alpha = p * inv                                                          # [N,N]
        # aggregation on the MXU with bf16 operands + bias; the reference applies
        # F.relu after EVERY layer (including the last)
        agg = jnp.dot(alpha.astype(bf16), hw.astype(bf16), preferred_element_type=f32)
        h = jnp.maximum(agg + gb_ref[l], 0.0)

    # global_mean_pool as pool_mat @ h (bf16 MXU operands, f32 accumulation)
    graph_repr = jnp.dot(pool_ref[...], h.astype(bf16), preferred_element_type=f32)  # [BP,HP]
    # combine_layer on concat([graph_repr, g]) == graph_repr @ Wp + g @ Wg
    comb = (jnp.dot(graph_repr, cwp_ref[...], preferred_element_type=f32)
            + jnp.dot(g, cwg_ref[...], preferred_element_type=f32)
            + cb_ref[...])
    comb = jnp.maximum(comb, 0.0)
    # output head: lane-dense [BP,128] slab (real value lives in column 0)
    o_ref[...] = jnp.dot(comb, ow_ref[...], preferred_element_type=f32) + ob_ref[...]


# --------------------------- parameters & forward ---------------------------

def init_params(key, protein_features, hidden_dim, num_layers):
    keys = jax.random.split(key, 4 + num_layers)

    def lin(k, fan_in, fan_out):
        k1, k2 = jax.random.split(k)
        w = jax.random.normal(k1, (fan_in, fan_out), jnp.float32) * 0.1
        b = jax.random.normal(k2, (fan_out,), jnp.float32) * 0.1
        return w, b

    emb_w, emb_b = lin(keys[0], protein_features, hidden_dim)
    glob_w, glob_b = lin(keys[1], 6, hidden_dim)                 # nn.Linear(6, H)
    comb_w, comb_b = lin(keys[2], hidden_dim * 2, hidden_dim)
    out_w, out_b = lin(keys[3], hidden_dim, 1)

    gat = []
    for i in range(num_layers):
        k = jax.random.split(keys[4 + i], 6)
        gat.append(dict(
            w=jax.random.normal(k[0], (hidden_dim, hidden_dim), jnp.float32) * 0.1,
            att_src=jax.random.normal(k[1], (hidden_dim,), jnp.float32) * 0.1,
            att_dst=jax.random.normal(k[2], (hidden_dim,), jnp.float32) * 0.1,
            lin_edge_w=jax.random.normal(k[3], (hidden_dim, 1), jnp.float32) * 0.1,
            att_edge=jax.random.normal(k[4], (hidden_dim,), jnp.float32) * 0.1,
            bias=jax.random.normal(k[5], (hidden_dim,), jnp.float32) * 0.1,
        ))
    return dict(emb_w=emb_w, emb_b=emb_b, glob_w=glob_w, glob_b=glob_b,
                comb_w=comb_w, comb_b=comb_b, out_w=out_w, out_b=out_b, gat=gat)


def protein_gat_forward(params, x, gfeat, adj, edge_scalar, pool_mat):
    N, F = x.shape
    B, G = gfeat.shape
    hidden = params['emb_w'].shape[1]
    num_layers = len(params['gat'])

    HP = _round_up(hidden, LANE)
    FP = _round_up(F, LANE)
    GP = _round_up(G, LANE)
    BP = _round_up(B, SUBLANE)

    f32, bf16 = jnp.float32, jnp.bfloat16

    # -------- layout plumbing: zero-pad everything to lane-dense widths -------
    x_p = _pad2d(x, N, FP)
    g_p = _pad2d(gfeat, BP, GP)
    pool_p = _pad2d(pool_mat, BP, N).astype(bf16)          # mean-pool matrix, MXU operand

    # adjacency shipped ONCE as an additive -1e30 bias (bf16: half the HBM/VMEM bytes,
    # no per-layer mask selects in-kernel); edge scalars shipped bf16
    neg_bias = jnp.where(adj > 0.0, 0.0, NEG).astype(bf16)
    es_p = edge_scalar.astype(bf16)

    emb_w = _pad2d(params['emb_w'], FP, HP)
    emb_b = _pad2d(params['emb_b'].reshape(1, -1), 1, HP)
    glob_w = _pad2d(params['glob_w'], GP, HP)
    glob_b = _pad2d(params['glob_b'].reshape(1, -1), 1, HP)

    gw = jnp.stack([_pad2d(l['w'], HP, HP) for l in params['gat']]).astype(bf16)
    gas = jnp.stack([_pad2d(l['att_src'].reshape(1, -1), 1, HP) for l in params['gat']])
    gad = jnp.stack([_pad2d(l['att_dst'].reshape(1, -1), 1, HP) for l in params['gat']])
    gb = jnp.stack([_pad2d(l['bias'].reshape(1, -1), 1, HP) for l in params['gat']])

    # hoisted per-layer edge coefficient: elog = c_l * edge_scalar (valid because the
    # reference lin_edge is bias-free and edge features are scalars -> linear map)
    c_all = jnp.stack([jnp.sum(l['lin_edge_w'][:, 0] * l['att_edge'])
                       for l in params['gat']]).astype(f32)

    # combine_layer on torch.cat([graph_repr, global_feat]): first `hidden` rows act on
    # graph_repr, the remaining rows on the global embedding (matches reference order)
    cwp = _pad2d(params['comb_w'][:hidden], HP, HP)
    cwg = _pad2d(params['comb_w'][hidden:], HP, HP)
    cb = _pad2d(params['comb_b'].reshape(1, -1), 1, HP)
    ow = _pad2d(params['out_w'], HP, HP)
    ob = _pad2d(params['out_b'].reshape(1, -1), 1, HP)

    operands = (c_all, x_p, g_p, neg_bias, es_p, pool_p,
                emb_w, emb_b, glob_w, glob_b,
                gw, gas, gad, gb,
                cwp, cwg, cb, ow, ob)

    # ---- compiler hints: scoped VMEM sized from the actual resident footprint ----
    inout_bytes = sum(int(a.size) * a.dtype.itemsize for a in operands) + BP * HP * 4
    scratch_bytes = 6 * N * N * 4 + 4 * N * HP * 4         # transient softmax-chain temps
    vmem_limit = int(min(64 * 2 ** 20,                      # v7x physical per-TC ceiling
                         max(32 * 2 ** 20, 2 * (inout_bytes + scratch_bytes))))

    matmul_flops = (2 * N * FP * HP + 2 * BP * GP * HP              # embeddings
                    + num_layers * (2 * N * HP * HP                 # projection
                                    + 2 * N * N * HP                # aggregation
                                    + 4 * N * HP)                   # attention dots
                    + 2 * BP * N * HP                               # pooling
                    + 4 * BP * HP * HP + 2 * BP * HP * HP)          # combine + head
    vpu_flops = num_layers * 12 * N * N                             # softmax chain
    cost = pl.CostEstimate(flops=matmul_flops + vpu_flops,
                           transcendentals=num_layers * (N * N + N),
                           bytes_accessed=inout_bytes)

    vmem = pl.BlockSpec(memory_space=pltpu.MemorySpace.VMEM)
    smem = pl.BlockSpec(memory_space=pltpu.MemorySpace.SMEM)

    out = pl.pallas_call(
        functools.partial(_protein_gat_fused_kernel, num_layers=num_layers),
        out_shape=jax.ShapeDtypeStruct((BP, HP), jnp.float32),
        in_specs=[smem] + [vmem] * 18,
        out_specs=vmem,
        compiler_params=pltpu.CompilerParams(vmem_limit_bytes=vmem_limit),
        cost_estimate=cost,
    )(*operands)

    return out[:B, :1]


# ---------------------------------- main ------------------------------------

if __name__ == "__main__":
    key = jax.random.PRNGKey(0)
    protein_features = 8
    hidden_dim = 32
    num_layers = 2
    nodes_per_graph = 8
    B = 2
    N = nodes_per_graph * B

    k_x, k_g, k_e, k_p = jax.random.split(key, 4)
    x = jax.random.normal(k_x, (N, protein_features), jnp.float32)
    gfeat = jax.random.normal(k_g, (B, 6), jnp.float32)

    # synthetic edges: bidirectional ring within each graph (every node has in-edges)
    src_list, dst_list = [], []
    for b in range(B):
        off = b * nodes_per_graph
        for i in range(nodes_per_graph):
            j = (i + 1) % nodes_per_graph
            src_list += [off + i, off + j]
            dst_list += [off + j, off + i]
    src = jnp.array(src_list, jnp.int32)
    dst = jnp.array(dst_list, jnp.int32)
    edge_attr = jax.random.uniform(k_e, (src.shape[0],), jnp.float32)

    # dense adjacency [dst, src] and per-edge scalar attribute matrix (glue)
    adj = jnp.zeros((N, N), jnp.float32).at[dst, src].set(1.0)
    edge_scalar = jnp.zeros((N, N), jnp.float32).at[dst, src].set(edge_attr)

    # pooling matrix for global_mean_pool
    batch = jnp.repeat(jnp.arange(B), nodes_per_graph)
    pool_mat = (batch[None, :] == jnp.arange(B)[:, None]).astype(jnp.float32)
    pool_mat = pool_mat / jnp.sum(pool_mat, axis=1, keepdims=True)

    params = init_params(k_p, protein_features, hidden_dim, num_layers)

    fwd = jax.jit(protein_gat_forward)
    out = fwd(params, x, gfeat, adj, edge_scalar, pool_mat)
    out = jax.block_until_ready(out)
    assert out.shape == (B, 1) and out.dtype == jnp.float32
    print("KERNEL_OK")
</pallas_src>

<mosaic_0001>
module attributes {stable_mosaic.version = 11 : i64} {
  func.func @_protein_gat_fused_kernel(%arg0: memref<2xf32, #tpu.memory_space<smem>>, %arg1: memref<16x128xf32, #tpu.memory_space<vmem>>, %arg2: memref<8x128xf32, #tpu.memory_space<vmem>>, %arg3: memref<16x16xbf16, #tpu.memory_space<vmem>>, %arg4: memref<16x16xbf16, #tpu.memory_space<vmem>>, %arg5: memref<8x16xbf16, #tpu.memory_space<vmem>>, %arg6: memref<128x128xf32, #tpu.memory_space<vmem>>, %arg7: memref<1x128xf32, #tpu.memory_space<vmem>>, %arg8: memref<128x128xf32, #tpu.memory_space<vmem>>, %arg9: memref<1x128xf32, #tpu.memory_space<vmem>>, %arg10: memref<2x128x128xbf16, #tpu.memory_space<vmem>>, %arg11: memref<2x1x128xf32, #tpu.memory_space<vmem>>, %arg12: memref<2x1x128xf32, #tpu.memory_space<vmem>>, %arg13: memref<2x1x128xf32, #tpu.memory_space<vmem>>, %arg14: memref<128x128xf32, #tpu.memory_space<vmem>>, %arg15: memref<128x128xf32, #tpu.memory_space<vmem>>, %arg16: memref<1x128xf32, #tpu.memory_space<vmem>>, %arg17: memref<128x128xf32, #tpu.memory_space<vmem>>, %arg18: memref<1x128xf32, #tpu.memory_space<vmem>>, %arg19: memref<8x128xf32, #tpu.memory_space<vmem>>) attributes {dimension_semantics = [], scalar_prefetch = 0 : i64, scratch_operands = 0 : i64, tpu.core_type = #tpu.core_type<tc>} {
    %c0 = arith.constant 0 : index
    %c0_0 = arith.constant 0 : index
    %0 = vector.load %arg1[%c0, %c0_0] : memref<16x128xf32, #tpu.memory_space<vmem>>, vector<16x128xf32>
    %c0_1 = arith.constant 0 : index
    %c0_2 = arith.constant 0 : index
    %1 = vector.load %arg6[%c0_1, %c0_2] : memref<128x128xf32, #tpu.memory_space<vmem>>, vector<128x128xf32>
    %cst = arith.constant dense<0.000000e+00> : vector<16x128xf32>
    %2 = tpu.matmul %0, %1, %cst {dimension_numbers = #tpu.dot_dimension_numbers<[1], [0], [0], [1], [0, 0, 1, 1], [], []>} : vector<16x128xf32>, vector<128x128xf32>, vector<16x128xf32> -> vector<16x128xf32>
    %c0_3 = arith.constant 0 : index
    %c0_4 = arith.constant 0 : index
    %3 = vector.load %arg7[%c0_3, %c0_4] : memref<1x128xf32, #tpu.memory_space<vmem>>, vector<1x128xf32>
    %4 = vector.broadcast %3 : vector<1x128xf32> to vector<16x128xf32>
    %5 = arith.addf %2, %4 : vector<16x128xf32>
    %c0_5 = arith.constant 0 : index
    %c0_6 = arith.constant 0 : index
    %6 = vector.load %arg2[%c0_5, %c0_6] : memref<8x128xf32, #tpu.memory_space<vmem>>, vector<8x128xf32>
    %c0_7 = arith.constant 0 : index
    %c0_8 = arith.constant 0 : index
    %7 = vector.load %arg8[%c0_7, %c0_8] : memref<128x128xf32, #tpu.memory_space<vmem>>, vector<128x128xf32>
    %cst_9 = arith.constant dense<0.000000e+00> : vector<8x128xf32>
    %8 = tpu.matmul %6, %7, %cst_9 {dimension_numbers = #tpu.dot_dimension_numbers<[1], [0], [0], [1], [0, 0, 1, 1], [], []>} : vector<8x128xf32>, vector<128x128xf32>, vector<8x128xf32> -> vector<8x128xf32>
    %c0_10 = arith.constant 0 : index
    %c0_11 = arith.constant 0 : index
    %9 = vector.load %arg9[%c0_10, %c0_11] : memref<1x128xf32, #tpu.memory_space<vmem>>, vector<1x128xf32>
    %10 = vector.broadcast %9 : vector<1x128xf32> to vector<8x128xf32>
    %11 = arith.addf %8, %10 : vector<8x128xf32>
    %12 = arith.truncf %5 : vector<16x128xf32> to vector<16x128xbf16>
    %c0_12 = arith.constant 0 : index
    %c0_13 = arith.constant 0 : index
    %c0_14 = arith.constant 0 : index
    %13 = vector.load %arg10[%c0_12, %c0_13, %c0_14] : memref<2x128x128xbf16, #tpu.memory_space<vmem>>, vector<1x128x128xbf16>
    %14 = vector.shape_cast %13 : vector<1x128x128xbf16> to vector<128x128xbf16>
    %cst_15 = arith.constant dense<0.000000e+00> : vector<16x128xf32>
    %15 = tpu.matmul %12, %14, %cst_15 {dimension_numbers = #tpu.dot_dimension_numbers<[1], [0], [0], [1], [0, 0, 1, 1], [], []>} : vector<16x128xbf16>, vector<128x128xbf16>, vector<16x128xf32> -> vector<16x128xf32>
    %c0_16 = arith.constant 0 : index
    %c0_17 = arith.constant 0 : index
    %c0_18 = arith.constant 0 : index
    %16 = vector.load %arg12[%c0_16, %c0_17, %c0_18] : memref<2x1x128xf32, #tpu.memory_space<vmem>>, vector<1x1x128xf32>
    %17 = vector.shape_cast %16 : vector<1x1x128xf32> to vector<1x128xf32>
    %18 = vector.broadcast %17 : vector<1x128xf32> to vector<16x128xf32>
    %19 = arith.mulf %15, %18 : vector<16x128xf32>
    %cst_19 = arith.constant dense<0.000000e+00> : vector<16xf32>
    %20 = vector.multi_reduction <add>, %19, %cst_19 [1] : vector<16x128xf32> to vector<16xf32>
    %21 = vector.shape_cast %20 : vector<16xf32> to vector<16x1xf32>
    %c0_20 = arith.constant 0 : index
    %c0_21 = arith.constant 0 : index
    %c0_22 = arith.constant 0 : index
    %22 = vector.load %arg11[%c0_20, %c0_21, %c0_22] : memref<2x1x128xf32, #tpu.memory_space<vmem>>, vector<1x1x128xf32>
    %23 = vector.shape_cast %22 : vector<1x1x128xf32> to vector<1x128xf32>
    %cst_23 = arith.constant dense<0.000000e+00> : vector<1x16xf32>
    %24 = tpu.matmul %23, %15, %cst_23 {dimension_numbers = #tpu.dot_dimension_numbers<[1], [1], [0], [0], [0, 0, 1, 0], [], []>} : vector<1x128xf32>, vector<16x128xf32>, vector<1x16xf32> -> vector<1x16xf32>
    %25 = vector.broadcast %21 : vector<16x1xf32> to vector<16x16xf32>
    %26 = vector.broadcast %24 : vector<1x16xf32> to vector<16x16xf32>
    %27 = arith.addf %25, %26 : vector<16x16xf32>
    %c0_24 = arith.constant 0 : index
    %28 = memref.load %arg0[%c0_24] : memref<2xf32, #tpu.memory_space<smem>>
    %c0_25 = arith.constant 0 : index
    %c0_26 = arith.constant 0 : index
    %29 = vector.load %arg4[%c0_25, %c0_26] : memref<16x16xbf16, #tpu.memory_space<vmem>>, vector<16x16xbf16>
    %30 = arith.extf %29 : vector<16x16xbf16> to vector<16x16xf32>
    %31 = vector.broadcast %28 : f32 to vector<16x16xf32>
    %32 = arith.mulf %31, %30 : vector<16x16xf32>
    %33 = arith.addf %27, %32 : vector<16x16xf32>
    %cst_27 = arith.constant 2.000000e-01 : f32
    %34 = vector.broadcast %cst_27 : f32 to vector<16x16xf32>
    %35 = arith.mulf %34, %33 : vector<16x16xf32>
    %36 = arith.maximumf %33, %35 : vector<16x16xf32>
    %c0_28 = arith.constant 0 : index
    %c0_29 = arith.constant 0 : index
    %37 = vector.load %arg3[%c0_28, %c0_29] : memref<16x16xbf16, #tpu.memory_space<vmem>>, vector<16x16xbf16>
    %38 = arith.extf %37 : vector<16x16xbf16> to vector<16x16xf32>
    %39 = arith.addf %36, %38 : vector<16x16xf32>
    %cst_30 = arith.constant dense<0xFF800000> : vector<16xf32>
    %40 = vector.multi_reduction <maximumf>, %39, %cst_30 [1] : vector<16x16xf32> to vector<16xf32>
    %41 = vector.shape_cast %40 : vector<16xf32> to vector<16x1xf32>
    %cst_31 = arith.constant -5.000000e+29 : f32
    %42 = vector.broadcast %cst_31 : f32 to vector<16x1xf32>
    %43 = arith.cmpf ogt, %41, %42 : vector<16x1xf32>
    %cst_32 = arith.constant 0.000000e+00 : f32
    %44 = vector.broadcast %cst_32 : f32 to vector<16x1xf32>
    %45 = arith.select %43, %41, %44 : vector<16x1xi1>, vector<16x1xf32>
    %46 = vector.broadcast %45 : vector<16x1xf32> to vector<16x16xf32>
    %47 = arith.subf %39, %46 : vector<16x16xf32>
    %48 = math.exp %47 : vector<16x16xf32>
    %cst_33 = arith.constant dense<0.000000e+00> : vector<16xf32>
    %49 = vector.multi_reduction <add>, %48, %cst_33 [1] : vector<16x16xf32> to vector<16xf32>
    %50 = vector.shape_cast %49 : vector<16xf32> to vector<16x1xf32>
    %cst_34 = arith.constant 0.000000e+00 : f32
    %51 = vector.broadcast %cst_34 : f32 to vector<16x1xf32>
    %52 = arith.cmpf ogt, %50, %51 : vector<16x1xf32>
    %cst_35 = arith.constant 1.000000e+00 : f32
    %53 = vector.broadcast %cst_35 : f32 to vector<16x1xf32>
    %54 = arith.select %52, %50, %53 : vector<16x1xi1>, vector<16x1xf32>
    %55 = tpu.reciprocal %54 {approx = true} : vector<16x1xf32> -> vector<16x1xf32>
    %56 = vector.broadcast %55 : vector<16x1xf32> to vector<16x16xf32>
    %57 = arith.mulf %48, %56 : vector<16x16xf32>
    %58 = arith.truncf %57 : vector<16x16xf32> to vector<16x16xbf16>
    %59 = arith.truncf %15 : vector<16x128xf32> to vector<16x128xbf16>
    %cst_36 = arith.constant dense<0.000000e+00> : vector<16x128xf32>
    %60 = tpu.matmul %58, %59, %cst_36 {dimension_numbers = #tpu.dot_dimension_numbers<[1], [0], [0], [1], [0, 0, 1, 1], [], []>} : vector<16x16xbf16>, vector<16x128xbf16>, vector<16x128xf32> -> vector<16x128xf32>
    %c0_37 = arith.constant 0 : index
    %c0_38 = arith.constant 0 : index
    %c0_39 = arith.constant 0 : index
    %61 = vector.load %arg13[%c0_37, %c0_38, %c0_39] : memref<2x1x128xf32, #tpu.memory_space<vmem>>, vector<1x1x128xf32>
    %62 = vector.shape_cast %61 : vector<1x1x128xf32> to vector<1x128xf32>
    %63 = vector.broadcast %62 : vector<1x128xf32> to vector<16x128xf32>
    %64 = arith.addf %60, %63 : vector<16x128xf32>
    %cst_40 = arith.constant 0.000000e+00 : f32
    %65 = vector.broadcast %cst_40 : f32 to vector<16x128xf32>
    %66 = arith.maximumf %64, %65 : vector<16x128xf32>
    %67 = arith.truncf %66 : vector<16x128xf32> to vector<16x128xbf16>
    %c1 = arith.constant 1 : index
    %c0_41 = arith.constant 0 : index
    %c0_42 = arith.constant 0 : index
    %68 = vector.load %arg10[%c1, %c0_41, %c0_42] : memref<2x128x128xbf16, #tpu.memory_space<vmem>>, vector<1x128x128xbf16>
    %69 = vector.shape_cast %68 : vector<1x128x128xbf16> to vector<128x128xbf16>
    %cst_43 = arith.constant dense<0.000000e+00> : vector<16x128xf32>
    %70 = tpu.matmul %67, %69, %cst_43 {dimension_numbers = #tpu.dot_dimension_numbers<[1], [0], [0], [1], [0, 0, 1, 1], [], []>} : vector<16x128xbf16>, vector<128x128xbf16>, vector<16x128xf32> -> vector<16x128xf32>
    %c1_44 = arith.constant 1 : index
    %c0_45 = arith.constant 0 : index
    %c0_46 = arith.constant 0 : index
    %71 = vector.load %arg12[%c1_44, %c0_45, %c0_46] : memref<2x1x128xf32, #tpu.memory_space<vmem>>, vector<1x1x128xf32>
    %72 = vector.shape_cast %71 : vector<1x1x128xf32> to vector<1x128xf32>
    %73 = vector.broadcast %72 : vector<1x128xf32> to vector<16x128xf32>
    %74 = arith.mulf %70, %73 : vector<16x128xf32>
    %cst_47 = arith.constant dense<0.000000e+00> : vector<16xf32>
    %75 = vector.multi_reduction <add>, %74, %cst_47 [1] : vector<16x128xf32> to vector<16xf32>
    %76 = vector.shape_cast %75 : vector<16xf32> to vector<16x1xf32>
    %c1_48 = arith.constant 1 : index
    %c0_49 = arith.constant 0 : index
    %c0_50 = arith.constant 0 : index
    %77 = vector.load %arg11[%c1_48, %c0_49, %c0_50] : memref<2x1x128xf32, #tpu.memory_space<vmem>>, vector<1x1x128xf32>
    %78 = vector.shape_cast %77 : vector<1x1x128xf32> to vector<1x128xf32>
    %cst_51 = arith.constant dense<0.000000e+00> : vector<1x16xf32>
    %79 = tpu.matmul %78, %70, %cst_51 {dimension_numbers = #tpu.dot_dimension_numbers<[1], [1], [0], [0], [0, 0, 1, 0], [], []>} : vector<1x128xf32>, vector<16x128xf32>, vector<1x16xf32> -> vector<1x16xf32>
    %80 = vector.broadcast %76 : vector<16x1xf32> to vector<16x16xf32>
    %81 = vector.broadcast %79 : vector<1x16xf32> to vector<16x16xf32>
    %82 = arith.addf %80, %81 : vector<16x16xf32>
    %c1_52 = arith.constant 1 : index
    %83 = memref.load %arg0[%c1_52] : memref<2xf32, #tpu.memory_space<smem>>
    %c0_53 = arith.constant 0 : index
    %c0_54 = arith.constant 0 : index
    %84 = vector.load %arg4[%c0_53, %c0_54] : memref<16x16xbf16, #tpu.memory_space<vmem>>, vector<16x16xbf16>
    %85 = arith.extf %84 : vector<16x16xbf16> to vector<16x16xf32>
    %86 = vector.broadcast %83 : f32 to vector<16x16xf32>
    %87 = arith.mulf %86, %85 : vector<16x16xf32>
    %88 = arith.addf %82, %87 : vector<16x16xf32>
    %cst_55 = arith.constant 2.000000e-01 : f32
    %89 = vector.broadcast %cst_55 : f32 to vector<16x16xf32>
    %90 = arith.mulf %89, %88 : vector<16x16xf32>
    %91 = arith.maximumf %88, %90 : vector<16x16xf32>
    %c0_56 = arith.constant 0 : index
    %c0_57 = arith.constant 0 : index
    %92 = vector.load %arg3[%c0_56, %c0_57] : memref<16x16xbf16, #tpu.memory_space<vmem>>, vector<16x16xbf16>
    %93 = arith.extf %92 : vector<16x16xbf16> to vector<16x16xf32>
    %94 = arith.addf %91, %93 : vector<16x16xf32>
    %cst_58 = arith.constant dense<0xFF800000> : vector<16xf32>
    %95 = vector.multi_reduction <maximumf>, %94, %cst_58 [1] : vector<16x16xf32> to vector<16xf32>
    %96 = vector.shape_cast %95 : vector<16xf32> to vector<16x1xf32>
    %cst_59 = arith.constant -5.000000e+29 : f32
    %97 = vector.broadcast %cst_59 : f32 to vector<16x1xf32>
    %98 = arith.cmpf ogt, %96, %97 : vector<16x1xf32>
    %cst_60 = arith.constant 0.000000e+00 : f32
    %99 = vector.broadcast %cst_60 : f32 to vector<16x1xf32>
    %100 = arith.select %98, %96, %99 : vector<16x1xi1>, vector<16x1xf32>
    %101 = vector.broadcast %100 : vector<16x1xf32> to vector<16x16xf32>
    %102 = arith.subf %94, %101 : vector<16x16xf32>
    %103 = math.exp %102 : vector<16x16xf32>
    %cst_61 = arith.constant dense<0.000000e+00> : vector<16xf32>
    %104 = vector.multi_reduction <add>, %103, %cst_61 [1] : vector<16x16xf32> to vector<16xf32>
    %105 = vector.shape_cast %104 : vector<16xf32> to vector<16x1xf32>
    %cst_62 = arith.constant 0.000000e+00 : f32
    %106 = vector.broadcast %cst_62 : f32 to vector<16x1xf32>
    %107 = arith.cmpf ogt, %105, %106 : vector<16x1xf32>
    %cst_63 = arith.constant 1.000000e+00 : f32
    %108 = vector.broadcast %cst_63 : f32 to vector<16x1xf32>
    %109 = arith.select %107, %105, %108 : vector<16x1xi1>, vector<16x1xf32>
    %110 = tpu.reciprocal %109 {approx = true} : vector<16x1xf32> -> vector<16x1xf32>
    %111 = vector.broadcast %110 : vector<16x1xf32> to vector<16x16xf32>
    %112 = arith.mulf %103, %111 : vector<16x16xf32>
    %113 = arith.truncf %112 : vector<16x16xf32> to vector<16x16xbf16>
    %114 = arith.truncf %70 : vector<16x128xf32> to vector<16x128xbf16>
    %cst_64 = arith.constant dense<0.000000e+00> : vector<16x128xf32>
    %115 = tpu.matmul %113, %114, %cst_64 {dimension_numbers = #tpu.dot_dimension_numbers<[1], [0], [0], [1], [0, 0, 1, 1], [], []>} : vector<16x16xbf16>, vector<16x128xbf16>, vector<16x128xf32> -> vector<16x128xf32>
    %c1_65 = arith.constant 1 : index
    %c0_66 = arith.constant 0 : index
    %c0_67 = arith.constant 0 : index
    %116 = vector.load %arg13[%c1_65, %c0_66, %c0_67] : memref<2x1x128xf32, #tpu.memory_space<vmem>>, vector<1x1x128xf32>
    %117 = vector.shape_cast %116 : vector<1x1x128xf32> to vector<1x128xf32>
    %118 = vector.broadcast %117 : vector<1x128xf32> to vector<16x128xf32>
    %119 = arith.addf %115, %118 : vector<16x128xf32>
    %cst_68 = arith.constant 0.000000e+00 : f32
    %120 = vector.broadcast %cst_68 : f32 to vector<16x128xf32>
    %121 = arith.maximumf %119, %120 : vector<16x128xf32>
    %c0_69 = arith.constant 0 : index
    %c0_70 = arith.constant 0 : index
    %122 = vector.load %arg5[%c0_69, %c0_70] : memref<8x16xbf16, #tpu.memory_space<vmem>>, vector<8x16xbf16>
    %123 = arith.truncf %121 : vector<16x128xf32> to vector<16x128xbf16>
    %cst_71 = arith.constant dense<0.000000e+00> : vector<8x128xf32>
    %124 = tpu.matmul %122, %123, %cst_71 {dimension_numbers = #tpu.dot_dimension_numbers<[1], [0], [0], [1], [0, 0, 1, 1], [], []>} : vector<8x16xbf16>, vector<16x128xbf16>, vector<8x128xf32> -> vector<8x128xf32>
    %c0_72 = arith.constant 0 : index
    %c0_73 = arith.constant 0 : index
    %125 = vector.load %arg14[%c0_72, %c0_73] : memref<128x128xf32, #tpu.memory_space<vmem>>, vector<128x128xf32>
    %cst_74 = arith.constant dense<0.000000e+00> : vector<8x128xf32>
    %126 = tpu.matmul %124, %125, %cst_74 {dimension_numbers = #tpu.dot_dimension_numbers<[1], [0], [0], [1], [0, 0, 1, 1], [], []>} : vector<8x128xf32>, vector<128x128xf32>, vector<8x128xf32> -> vector<8x128xf32>
    %c0_75 = arith.constant 0 : index
    %c0_76 = arith.constant 0 : index
    %127 = vector.load %arg15[%c0_75, %c0_76] : memref<128x128xf32, #tpu.memory_space<vmem>>, vector<128x128xf32>
    %cst_77 = arith.constant dense<0.000000e+00> : vector<8x128xf32>
    %128 = tpu.matmul %11, %127, %cst_77 {dimension_numbers = #tpu.dot_dimension_numbers<[1], [0], [0], [1], [0, 0, 1, 1], [], []>} : vector<8x128xf32>, vector<128x128xf32>, vector<8x128xf32> -> vector<8x128xf32>
    %129 = arith.addf %126, %128 : vector<8x128xf32>
    %c0_78 = arith.constant 0 : index
    %c0_79 = arith.constant 0 : index
    %130 = vector.load %arg16[%c0_78, %c0_79] : memref<1x128xf32, #tpu.memory_space<vmem>>, vector<1x128xf32>
    %131 = vector.broadcast %130 : vector<1x128xf32> to vector<8x128xf32>
    %132 = arith.addf %129, %131 : vector<8x128xf32>
    %cst_80 = arith.constant 0.000000e+00 : f32
    %133 = vector.broadcast %cst_80 : f32 to vector<8x128xf32>
    %134 = arith.maximumf %132, %133 : vector<8x128xf32>
    %c0_81 = arith.constant 0 : index
    %c0_82 = arith.constant 0 : index
    %135 = vector.load %arg17[%c0_81, %c0_82] : memref<128x128xf32, #tpu.memory_space<vmem>>, vector<128x128xf32>
    %cst_83 = arith.constant dense<0.000000e+00> : vector<8x128xf32>
    %136 = tpu.matmul %134, %135, %cst_83 {dimension_numbers = #tpu.dot_dimension_numbers<[1], [0], [0], [1], [0, 0, 1, 1], [], []>} : vector<8x128xf32>, vector<128x128xf32>, vector<8x128xf32> -> vector<8x128xf32>
    %c0_84 = arith.constant 0 : index
    %c0_85 = arith.constant 0 : index
    %137 = vector.load %arg18[%c0_84, %c0_85] : memref<1x128xf32, #tpu.memory_space<vmem>>, vector<1x128xf32>
    %138 = vector.broadcast %137 : vector<1x128xf32> to vector<8x128xf32>
    %139 = arith.addf %136, %138 : vector<8x128xf32>
    %c0_86 = arith.constant 0 : index
    %c0_87 = arith.constant 0 : index
    %140 = vector.load %arg19[%c0_86, %c0_87] : memref<8x128xf32, #tpu.memory_space<vmem>>, vector<8x128xf32>
    tpu.vector_store %arg19[%c0_86, %c0_87], %139 {strides = array<i32>} : memref<8x128xf32, #tpu.memory_space<vmem>>, vector<8x128xf32>,
    return
  }
}

</mosaic_0001>

<bundles_post_ra>
// kernel: protein_gat_forward.1
= control target key start
LH: loop header
LB: loop body
LE: loop exit
PB: predicated region body
PF: predicated region fallthrough
CT: control target
= control target key end

     0   :  { %s2370_s0 = inlined_call_operand.vmem [shape: f32[2], index: 0, kind: input, shape index: {}]   ;;  %s2371_s1 = inlined_call_operand.vmem [shape: f32[16,128], index: 1, kind: input, shape index: {}]   ;;  %s2372_s2 = inlined_call_operand.vmem [shape: f32[8,128], index: 2, kind: input, shape index: {}]   ;;  %s2373_s3 = inlined_call_operand.vmem [shape: bf16[16,16], index: 3, kind: input, shape index: {}]   ;;  %s2374_s4 = inlined_call_operand.vmem [shape: bf16[16,16], index: 4, kind: input, shape index: {}]   ;;  %s2375_s5 = inlined_call_operand.vmem [shape: bf16[8,16], index: 5, kind: input, shape index: {}]   ;;  %s2376_s6 = inlined_call_operand.vmem [shape: f32[128,128], index: 6, kind: input, shape index: {}]   ;;  %s2377_s7 = inlined_call_operand.vmem [shape: f32[1,128], index: 7, kind: input, shape index: {}]   ;;  %s2378_s8 = inlined_call_operand.vmem [shape: f32[128,128], index: 8, kind: input, shape index: {}]   ;;  %s2379_s9 = inlined_call_operand.vmem [shape: f32[1,128], index: 9, kind: input, shape index: {}]   ;;  %s2380_s10 = inlined_call_operand.vmem [shape: bf16[2,128,128], index: 10, kind: input, shape index: {}]   ;;  %s2381_s11 = inlined_call_operand.vmem [shape: f32[2,1,128], index: 11, kind: input, shape index: {}]   ;;  %s2382_s12 = inlined_call_operand.vmem [shape: f32[2,1,128], index: 12, kind: input, shape index: {}]   ;;  %s2383_s13 = inlined_call_operand.vmem [shape: f32[2,1,128], index: 13, kind: input, shape index: {}]   ;;  %s2384_s14 = inlined_call_operand.vmem [shape: f32[128,128], index: 14, kind: input, shape index: {}]   ;;  %s2385_s15 = inlined_call_operand.vmem [shape: f32[128,128], index: 15, kind: input, shape index: {}]   ;;  %s2386_s16 = inlined_call_operand.vmem [shape: f32[1,128], index: 16, kind: input, shape index: {}]   ;;  %s2387_s17 = inlined_call_operand.vmem [shape: f32[128,128], index: 17, kind: input, shape index: {}]   ;;  %s2388_s18 = inlined_call_operand.vmem [shape: f32[1,128], index: 18, kind: input, shape index: {}]   ;;  %s2389_s19 = inlined_call_operand.vmem [shape: f32[8,128], index: 19, kind: output, shape index: {}]  }
   0x1   :  { %2391 = sst [smem:[#allocation5_spill]] %s2370_s0 }
   0x2   :  { %2392 = sst [smem:[#allocation6_spill]] %s2371_s1 }
   0x3   :  { %2393 = sst [smem:[#allocation7_spill]] %s2372_s2 }
   0x4   :  { %2394 = sst [smem:[#allocation8_spill]] %s2373_s3 }
   0x5   :  { %24 = vsyncpa [#allocation3], 0  ;;  %s2395_s20 = sld [smem:[#allocation5_spill]] }
   0xb   :  { %s31_s21 = sshll.u32 %s2395_s20, 4  ;;  %s32_s21 = int_to_ptr.vmem [resolvable:$true] %s31_s21 }
   0xc   :  { %s1782_s1 = scalar_lea.vmem %s32_s21, 16  ;;  %p1787_p1 = scmp.lt.s32.totalorder %s32_s21, %s32_s21 }
   0xd   :  { %p1783_p0 = scmp.ne.s32.totalorder %s32_s21, %s1782_s1  ;;  %p1788_p2 = scmp.lt.s32.totalorder %s1782_s1, %s1782_s1 }
   0xf   :  { %p1789_p3 = por %p1788_p2, %p1787_p1 }
  0x11   :  { %p1790_p4 = pnand %p1789_p3, %p1783_p0 }
  0x13   :  { %1793 = shalt.err (!%p1790_p4)
}
  0x14   :  { %s1796_s22 = smov [#allocation2]  }
  0x15   :  { %34 = dma.vmem_to_smem %s32_s21, 16, %s1796_s22, [#allocation3]  }
  0x16   :  { %1794 = dma.done.wait [#allocation3], 16  }
  0x17   :  { %1795 = vsyncadd [#allocation3], 4294967280 }
  0x18   :  { %74 = sfence }
  0x19   :  { %v78_v0 = vld [vmem:[%s2376_s6] sm:$0xff]  ;;  %v79_v1 = vld [vmem:[%s2376_s6 + $0x8] sm:$0xff]  ;;  %v80_v2 = vld [vmem:[%s2376_s6 + $0x10] sm:$0xff]  ;;  %s2396_s23 = sld [smem:[#allocation6_spill]]  ;;  %v1797_v27 = vmov 0.0   ;;  %vm1798_vm0 = vmmov 0   ;;  %v460_v51 = vlaneseq }
  0x1a   :  { %v1612_v3 = vpack.c.bf16 %v79_v1, %v78_v0  ;;  %v81_v4 = vld [vmem:[%s2376_s6 + $0x18] sm:$0xff]  ;;  %v82_v6 = vld [vmem:[%s2376_s6 + $0x20] sm:$0xff]  ;;  %v83_v7 = vld [vmem:[%s2376_s6 + $0x28] sm:$0xff]  ;;  %1432 = vmatprep.mubr.msk.f32.mxu1 %vm1798_vm0, %v1797_v27  ;;  %v1799_v41 = vmov 0.0|0.0   ;;  %s466_s21 = sld [smem:[#allocation2]]  ;;  %s2397_s2 = sld [smem:[#allocation8_spill]] }
  0x1b   :  { %v1616_v5 = vpack.c.bf16 %v81_v4, %v80_v2  ;;  %v1620_v8 = vpack.c.bf16 %v83_v7, %v82_v6  ;;  %v84_v9 = vld [vmem:[%s2376_s6 + $0x30] sm:$0xff]  ;;  %v85_v11 = vld [vmem:[%s2376_s6 + $0x38] sm:$0xff]  ;;  %v86_v13 = vld [vmem:[%s2376_s6 + $0x40] sm:$0xff]  ;;  %1644 = vmatprep.subr.bf16.mxu1 %v1799_v41  ;;  %v2010_v52 = vshrl.u32 %v460_v51, 7  ;;  %vm486_vm1 = vcmask 130048   ;;  %s2398_s22 = sld [smem:[#allocation7_spill]] }
  0x1c   :  { %1613 = vmatprep.subr.bf16.mxu0 %v1612_v3  ;;  %v1624_v12 = vpack.c.bf16 %v85_v11, %v84_v9  ;;  %v87_v14 = vld [vmem:[%s2376_s6 + $0x48] sm:$0xff]  ;;  %v88_v15 = vld [vmem:[%s2376_s6 + $0x50] sm:$0xff]  ;;  %v89_v16 = vld [vmem:[%s2376_s6 + $0x58] sm:$0xff] }
  0x1d   :  { %1615 = vmatpush3.bf16.msra.mxu0 %v1612_v3  ;;  %v1628_v17 = vpack.c.bf16 %v87_v14, %v86_v13  ;;  %v90_v18 = vld [vmem:[%s2376_s6 + $0x60] sm:$0xff]  ;;  %v91_v19 = vld [vmem:[%s2376_s6 + $0x68] sm:$0xff]  ;;  %v1632_v20 = vpack.c.bf16 %v89_v16, %v88_v15  ;;  %v92_v22 = vld [vmem:[%s2376_s6 + $0x70] sm:$0xff]  ;;  %v462_v55 = vsub.s32 0, %v2010_v52 }
  0x1e   :  { %1617 = vmatprep.subr.bf16.mxu0 %v1616_v5  ;;  %v1636_v21 = vpack.c.bf16 %v91_v19, %v90_v18  ;;  %v93_v23 = vld [vmem:[%s2376_s6 + $0x78] sm:$0xff]  ;;  %v1750_v26 = vld [vmem:[%s2380_s10] sm:$0xff]   ;;  %v1751_v28 = vld [vmem:[%s2380_s10 + $0x8] sm:$0xff]  }
  0x1f   :  { %v76_v10 = vld [vmem:[%s2396_s23] sm:$0xff]  ;;  %v1640_v24 = vpack.c.bf16 %v93_v23, %v92_v22  ;;  %v77_v25 = vld [vmem:[%s2396_s23 + $0x8] sm:$0xff]  ;;  %v1752_v29 = vld [vmem:[%s2380_s10 + $0x10] sm:$0xff]  }
  0x20   :  { %1397 = vmatprep.mubr.f32.mxu0 %v76_v10  ;;  %v1753_v30 = vld [vmem:[%s2380_s10 + $0x18] sm:$0xff]   ;;  %v1754_v31 = vld [vmem:[%s2380_s10 + $0x20] sm:$0xff]   ;;  %v1755_v32 = vld [vmem:[%s2380_s10 + $0x28] sm:$0xff]   ;;  %v471_v58 = vstv %s466_s21 }
  0x21   :  { %1619 = vmatpush3.bf16.msra.mxu0 %v1616_v5  ;;  %v1756_v33 = vld [vmem:[%s2380_s10 + $0x30] sm:$0xff]   ;;  %v1757_v34 = vld [vmem:[%s2380_s10 + $0x38] sm:$0xff]   ;;  %v1194_v35 = vld [vmem:[%s2377_s7] ss:$0 sm:$0xff] }
  0x22   :  { %1621 = vmatprep.subr.bf16.mxu0 %v1620_v8  ;;  %v1204_v42 = vld [vmem:[%s2382_s12] ss:$0 sm:$0xff]  ;;  %v191_v51 = vld [vmem:[%s2378_s8 + $0x70] sm:$0xff] }
  0x23   :  { %v389_v50 = vld [vmem:[%s2381_s11] sm:$0x1] }
  0x24   :  { %v2015_v53 = vld [vmem:[%s2374_s4] sm:$0xff]  }
  0x25   :  { %1623 = vmatpush3.bf16.msra.mxu0 %v1620_v8  ;;  %v1243_v56 = vunpack.c.l.bf16 %v2015_v53  ;;  %v1244_v57 = vunpack.c.h.bf16 %v2015_v53  ;;  %v2029_v3 = vld [vmem:[%s2397_s2] sm:$0xff]  }
  0x26   :  { %1625 = vmatprep.subr.bf16.mxu0 %v1624_v12  ;;  %v1247_v7 = vunpack.c.l.bf16 %v2029_v3  ;;  %v1248_v11 = vunpack.c.h.bf16 %v2029_v3 }
  0x27   :  { %v472_v61 = vmul.f32 %v1243_v56, %v471_v58  ;;  %v473_v62 = vmul.f32 %v1244_v57, %v471_v58 }
  0x29   :  { %1627 = vmatpush3.bf16.msra.mxu0 %v1624_v12 }
  0x2a   :  { %1629 = vmatprep.subr.bf16.mxu0 %v1628_v17 }
  0x2d   :  { %1631 = vmatpush3.bf16.msra.mxu0 %v1628_v17 }
  0x2e   :  { %1633 = vmatprep.subr.bf16.mxu0 %v1632_v20 }
  0x31   :  { %1635 = vmatpush3.bf16.msra.mxu0 %v1632_v20 }
  0x32   :  { %1637 = vmatprep.subr.bf16.mxu0 %v1636_v21 }
  0x35   :  { %1639 = vmatpush3.bf16.msra.mxu0 %v1636_v21 }
  0x36   :  { %1641 = vmatprep.subr.bf16.mxu0 %v1640_v24 }
  0x39   :  { %1643 = vmatpush3.bf16.msra.mxu0 %v1640_v24 }
  0x3a   :  { %1435 = vmatprep.subr.bf16.mxu0 %v1797_v27 }
  0x3c   :  { %1398 = vmatmul.mubr.f32.vlgmr.msra.gmra.mrb[0].mxu0 %v77_v25 }
  0x3d   :  { %1436 = vmatpush3.bf16.msra.mxu0 %v1750_v26  ;;  %1451 = vmatprep.mubr.msk.bf16.mxu0 %vm1798_vm0, %v1797_v27 }
  0x3e   :  { %1437 = vmatprep.subr.bf16.mxu0 %v1797_v27 }
  0x41   :  { %1438 = vmatpush3.bf16.msra.mxu0 %v1751_v28 }
  0x42   :  { %1439 = vmatprep.subr.bf16.mxu0 %v1797_v27 }
  0x45   :  { %1440 = vmatpush3.bf16.msra.mxu0 %v1752_v29  ;;  %v177_v29 = vld [vmem:[%s2378_s8] sm:$0xff] }
  0x46   :  { %1441 = vmatprep.subr.bf16.mxu0 %v1797_v27 }
  0x49   :  { %1442 = vmatpush3.bf16.msra.mxu0 %v1753_v30  ;;  %v178_v30 = vld [vmem:[%s2378_s8 + $0x8] sm:$0xff] }
  0x4a   :  { %1443 = vmatprep.subr.bf16.mxu0 %v1797_v27 }
  0x4d   :  { %1444 = vmatpush3.bf16.msra.mxu0 %v1754_v31  ;;  %v179_v31 = vld [vmem:[%s2378_s8 + $0x10] sm:$0xff] }
  0x4e   :  { %1445 = vmatprep.subr.bf16.mxu0 %v1797_v27 }
  0x51   :  { %1446 = vmatpush3.bf16.msra.mxu0 %v1755_v32  ;;  %v1645_v32 = vpack.c.bf16 %v178_v30, %v177_v29 }
  0x52   :  { %1447 = vmatprep.subr.bf16.mxu0 %v1797_v27 }
  0x53   :  { %1646 = vmatpush3.bf16.msra.mxu1 %v1645_v32  ;;  %v932_v32 = vld [vmem:[%s2385_s15 + $0x10] sm:$0xff] }
  0x54   :  { %1647 = vmatprep.subr.bf16.mxu1 %v1799_v41 }
  0x55   :  { %1448 = vmatpush3.bf16.msra.mxu0 %v1756_v33  ;;  %v180_v33 = vld [vmem:[%s2378_s8 + $0x18] sm:$0xff] }
  0x56   :  { %1449 = vmatprep.subr.bf16.mxu0 %v1797_v27 }
  0x59   :  { %1450 = vmatpush3.bf16.msra.mxu0 %v1757_v34  ;;  %v1648_v34 = vpack.c.bf16 %v180_v33, %v179_v31  ;;  %v933_v33 = vld [vmem:[%s2385_s15 + $0x18] sm:$0xff] }
  0x5a   :  { %1668 = vmatprep.subr.bf16.mxu0 %v1799_v41 }
  0x5b   :  { %1649 = vmatpush3.bf16.msra.mxu1 %v1648_v34  ;;  %v1678_v34 = vpack.c.bf16 %v933_v33, %v932_v32 }
  0x5c   :  { %1650 = vmatprep.subr.bf16.mxu1 %v1799_v41 }
 0x10f   :  { %v1399_v36 = vpop.f32.mrb[0].mxu0 }
 0x110   :  { %v173_v37 = vadd.f32 %v1399_v36, %v1194_v35  ;;  %v167_v38 = vpop.f32.mrb[1].mxu0  ;;  %v182_v36 = vld [vmem:[%s2378_s8 + $0x28] sm:$0xff] }
 0x111   :  { %v168_v39 = vadd.f32 %v1194_v35, %v167_v38  ;;  %v181_v35 = vld [vmem:[%s2378_s8 + $0x20] sm:$0xff]  ;;  %v183_v38 = vld [vmem:[%s2378_s8 + $0x30] sm:$0xff] }
 0x113   :  { %v270_v40 = vpack.c.bf16 %v173_v37, %v168_v39  ;;  %v1651_v37 = vpack.c.bf16 %v182_v36, %v181_v35  ;;  %v184_v39 = vld [vmem:[%s2378_s8 + $0x38] sm:$0xff]  ;;  %v934_v35 = vld [vmem:[%s2385_s15 + $0x20] sm:$0xff]  ;;  %v935_v36 = vld [vmem:[%s2385_s15 + $0x28] sm:$0xff] }
 0x115   :  { %1452 = vmatmul.mubr.bf16.vlgmr.msra.gmra.mrb[4].mxu0 %v270_v40  ;;  %1652 = vmatpush3.bf16.msra.mxu1 %v1651_v37  ;;  %v1654_v40 = vpack.c.bf16 %v184_v39, %v183_v38  ;;  %v1681_v37 = vpack.c.bf16 %v935_v36, %v934_v35  ;;  %v936_v38 = vld [vmem:[%s2385_s15 + $0x30] sm:$0xff]  ;;  %v937_v39 = vld [vmem:[%s2385_s15 + $0x38] sm:$0xff] }
 0x116   :  { %1459 = vmatprep.mubr.msk.f32.mxu0 %vm1798_vm0, %v1797_v27  ;;  %1653 = vmatprep.subr.bf16.mxu1 %v1799_v41 }
 0x119   :  { %1655 = vmatpush3.bf16.msra.mxu1 %v1654_v40  ;;  %v1684_v40 = vpack.c.bf16 %v937_v39, %v936_v38 }
 0x11a   :  { %1656 = vmatprep.subr.bf16.mxu1 %v1799_v41 }
 0x1e8   :  { %v369_v43 = vpop.f32.mrb[4].mxu0 }
 0x1e9   :  { %v1453_v44 = vpop.f32.mrb[5].mxu0  ;;  %v383_v45 = vmul.f32 %v1204_v42, %v369_v43 }
 0x1ea   :  { %v372_v46 = vpop.f32.mrb[6].mxu0 }
 0x1eb   :  { %v1669_v47 = vpack.c.bf16 %v372_v46, %v369_v43  ;;  %385 = vadd.xlane.f32.xlu0 %v383_v45  ;;  %v1454_v48 = vpop.f32.mrb[7].mxu0  ;;  %v384_v49 = vmul.f32 %v1204_v42, %v372_v46  ;;  %v185_v42 = vld [vmem:[%s2378_s8 + $0x40] sm:$0xff]  ;;  %v186_v43 = vld [vmem:[%s2378_s8 + $0x48] sm:$0xff]  ;;  %v187_v45 = vld [vmem:[%s2378_s8 + $0x50] sm:$0xff] }
 0x1ec   :  { %v1657_v44 = vpack.c.bf16 %v186_v43, %v185_v42  ;;  %v188_v46 = vld [vmem:[%s2378_s8 + $0x58] sm:$0xff]  ;;  %v189_v48 = vld [vmem:[%s2378_s8 + $0x60] sm:$0xff]  ;;  %v939_v43 = vld [vmem:[%s2385_s15 + $0x48] sm:$0xff] }
 0x1ed   :  { %1670 = vmatpush3.bf16.xpose.msra.mxu0 %v1669_v47  ;;  %v938_v42 = vld [vmem:[%s2385_s15 + $0x40] sm:$0xff] }
 0x1ee   :  { %1462 = vmatprep.subr.bf16.mxu0 %v1797_v27  ;;  %1658 = vmatpush3.bf16.msra.mxu1 %v1657_v44  ;;  %v1687_v44 = vpack.c.bf16 %v939_v43, %v938_v42 }
 0x1ef   :  { %387 = vadd.xlane.f32.xlu0 %v384_v49  ;;  %1659 = vmatprep.subr.bf16.mxu1 %v1799_v41  ;;  %v190_v49 = vld [vmem:[%s2378_s8 + $0x68] sm:$0xff] }
 0x1f4   :  { %1460 = vmatmul.mubr.f32.vlgmr.msra.gmra.mrb[2].mxu0 %v389_v50  ;;  %v1663_v50 = vpack.c.bf16 %v190_v49, %v189_v48  ;;  %v942_v48 = vld [vmem:[%s2385_s15 + $0x60] sm:$0xff]  ;;  %v943_v49 = vld [vmem:[%s2385_s15 + $0x68] sm:$0xff] }
 0x1f5   :  { %1463 = vmatpush3.bf16.msra.mxu0 %v1669_v47  ;;  %1464 = vmatprep.mubr.msk.bf16.mxu0 %vm1798_vm0, %v1797_v27  ;;  %v1660_v47 = vpack.c.bf16 %v188_v46, %v187_v45  ;;  %v940_v45 = vld [vmem:[%s2385_s15 + $0x50] sm:$0xff]  ;;  %v941_v46 = vld [vmem:[%s2385_s15 + $0x58] sm:$0xff] }
 0x1f6   :  { %1671 = vmatprep.subr.bf16.mxu0 %v1799_v41 }
 0x1f7   :  { %1661 = vmatpush3.bf16.msra.mxu1 %v1660_v47  ;;  %v1690_v47 = vpack.c.bf16 %v941_v46, %v940_v45  ;;  %v1236_v46 = vld [vmem:[%s2383_s13 + $0x1] ss:$0 sm:$0xff] }
 0x1f8   :  { %1662 = vmatprep.subr.bf16.mxu1 %v1799_v41 }
 0x1fb   :  { %1664 = vmatpush3.bf16.msra.mxu1 %v1663_v50  ;;  %v1693_v50 = vpack.c.bf16 %v943_v49, %v942_v48 }
 0x1fc   :  { %1665 = vmatprep.subr.bf16.mxu1 %v1799_v41 }
 0x278   :  { %v386_v54 = vpop.xlane.xlu0 %385 }
 0x27c   :  { %v388_v0 = vpop.xlane.xlu0 %387 }
 0x2c7   :  { %v456_v59 = vpop.f32.mrb[2].mxu0 }
 0x2c8   :  { %v463_v60 = vrot.slane %v456_v59, %v462_v55  ;;  %v1461_v63 = vpop.f32.mrb[3].mxu0  ;;  %v176_v59 = vld [vmem:[%s2398_s22] sm:$0xff] }
 0x2c9   :  { %v1761_v63 = vld [vmem:[%s2380_s10 + $0x58] sm:$0xff]  }
 0x2ca   :  { %v464_v1 = vadd.f32 %v463_v60, %v386_v54  ;;  %v465_v2 = vadd.f32 %v463_v60, %v388_v0  ;;  %v192_v54 = vld [vmem:[%s2378_s8 + $0x78] sm:$0xff]  ;;  %v1758_v60 = vld [vmem:[%s2380_s10 + $0x40] sm:$0xff]  }
 0x2cb   :  { %v1666_v58 = vpack.c.bf16 %v192_v54, %v191_v51  ;;  %v1762_v0 = vld [vmem:[%s2380_s10 + $0x60] sm:$0xff]   ;;  %v944_v51 = vld [vmem:[%s2385_s15 + $0x70] sm:$0xff]  ;;  %v945_v54 = vld [vmem:[%s2385_s15 + $0x78] sm:$0xff] }
 0x2cc   :  { %v474_v4 = vadd.f32 %v472_v61, %v464_v1  ;;  %v475_v5 = vadd.f32 %v473_v62, %v465_v2  ;;  %v1759_v61 = vld [vmem:[%s2380_s10 + $0x48] sm:$0xff]   ;;  %v1760_v62 = vld [vmem:[%s2380_s10 + $0x50] sm:$0xff]  }
 0x2cd   :  { %1667 = vmatpush3.bf16.msra.mxu1 %v1666_v58  ;;  %v1763_v1 = vld [vmem:[%s2380_s10 + $0x68] sm:$0xff]   ;;  %v1195_v58 = vld [vmem:[%s2379_s9] ss:$0 sm:$0xff] }
 0x2ce   :  { %v476_v6 = vmul.f32 0.2, %v474_v4  ;;  %v477_v8 = vmul.f32 0.2, %v475_v5  ;;  %1468 = vmatprep.subr.bf16.mxu1 %v1797_v27 }
 0x2d0   :  { %v478_v9 = vmax.f32 %v474_v4, %v476_v6  ;;  %v479_v10 = vmax.f32 %v475_v5, %v477_v8  ;;  %1433 = vmatmul.mubr.f32.vlgmr.msra.gmra.mrb[0].mxu1 %v176_v59  ;;  %v1696_v59 = vpack.c.bf16 %v945_v54, %v944_v51 }
 0x2d1   :  { %1469 = vmatpush3.bf16.msra.mxu1 %v1758_v60  ;;  %1484 = vmatprep.mubr.msk.bf16.mxu1 %vm1798_vm0, %v1797_v27 }
 0x2d2   :  { %v484_v12 = vadd.f32 %v1247_v7, %v478_v9  ;;  %v485_v14 = vadd.f32 %v1248_v11, %v479_v10  ;;  %1470 = vmatprep.subr.bf16.mxu1 %v1797_v27 }
 0x2d4   :  { %v487_v13 = vsel %vm486_vm1, %v484_v12, -inf  ;;  %v490_v15 = vsel %vm486_vm1, %v485_v14, -inf }
 0x2d5   :  { %488 = vmax.xlane.f32.xlu1 %v487_v13  ;;  %1471 = vmatpush3.bf16.msra.mxu1 %v1759_v61  ;;  %v1232_v61 = vld [vmem:[%s2382_s12 + $0x1] ss:$0 sm:$0xff]  ;;  %s1234_s12 = sld [smem:[#allocation2 + $0x1]] }
 0x2d6   :  { %1472 = vmatprep.subr.bf16.mxu1 %v1797_v27 }
 0x2d9   :  { %491 = vmax.xlane.f32.xlu1 %v490_v15  ;;  %1473 = vmatpush3.bf16.msra.mxu1 %v1760_v62  ;;  %v1765_v15 = vld [vmem:[%s2380_s10 + $0x78] sm:$0xff]  }
 0x2da   :  { %1474 = vmatprep.subr.bf16.mxu1 %v1797_v27 }
 0x2dd   :  { %1475 = vmatpush3.bf16.msra.mxu1 %v1761_v63 }
 0x2de   :  { %1476 = vmatprep.subr.bf16.mxu1 %v1797_v27 }
 0x2e1   :  { %1477 = vmatpush3.bf16.msra.mxu1 %v1762_v0 }
 0x2e2   :  { %1478 = vmatprep.subr.bf16.mxu1 %v1797_v27 }
 0x2e5   :  { %1479 = vmatpush3.bf16.msra.mxu1 %v1763_v1 }
 0x2e6   :  { %1480 = vmatprep.subr.bf16.mxu1 %v1797_v27 }
 0x362   :  { %v489_v16 = vpop.xlane.xlu1 %488 }
 0x363   :  { %vm493_vm2 = vcmp.gt.f32.partialorder %v489_v16, -5e+29 }
 0x364   :  { %v495_v17 = vsel %vm493_vm2, %v489_v16, 0.0 }
 0x365   :  { %v497_v18 = vsub.f32 %v484_v12, %v495_v17 }
 0x366   :  { %v492_v19 = vpop.xlane.xlu1 %491 }
 0x367   :  { %v499_v20 = vmul.f32 1.442695, %v497_v18  ;;  %vm494_vm3 = vcmp.gt.f32.partialorder %v492_v19, -5e+29  ;;  %v1205_v18 = vld [vmem:[%s2383_s13] ss:$0 sm:$0xff] }
 0x368   :  { %v496_v21 = vsel %vm494_vm3, %v492_v19, 0.0 }
 0x369   :  { %1766 = vpow2.f32 %v499_v20  ;;  %v498_v22 = vsub.f32 %v485_v14, %v496_v21  ;;  %v1764_v14 = vld [vmem:[%s2380_s10 + $0x70] sm:$0xff]  }
 0x36a   :  { %1481 = vmatpush3.bf16.msra.mxu1 %v1764_v14 }
 0x36b   :  { %v501_v23 = vmul.f32 1.442695, %v498_v22  ;;  %1482 = vmatprep.subr.bf16.mxu1 %v1797_v27 }
 0x36d   :  { %1768 = vpow2.f32 %v501_v23 }
 0x36e   :  { %1483 = vmatpush3.bf16.msra.mxu1 %v1765_v15 }
 0x36f   :  { %1674 = vmatprep.subr.bf16.mxu1 %v1799_v41 }
 0x373   :  { %v2039_v24 = vpop.eup %1766 }
 0x374   :  { %v503_v25 = vsel %vm486_vm1, %v2039_v24, 0.0 }
 0x375   :  { %504 = vadd.xlane.f32.xlu0 %v503_v25  ;;  %v930_v25 = vld [vmem:[%s2385_s15] sm:$0xff] }
 0x377   :  { %v2043_v26 = vpop.eup %1768 }
 0x378   :  { %v506_v28 = vsel %vm486_vm1, %v2043_v26, 0.0 }
 0x379   :  { %507 = vadd.xlane.f32.xlu1 %v506_v28 }
 0x3a3   :  { %v266_v16 = vpop.f32.mrb[0].mxu1 }
 0x3a4   :  { %v1434_v17 = vpop.f32.mrb[1].mxu1  ;;  %v267_v60 = vadd.f32 %v1195_v58, %v266_v16 }
 0x402   :  { %v505_v2 = vpop.xlane.xlu0 %504 }
 0x403   :  { %vm509_vm4 = vcmp.gt.f32.partialorder %v505_v2, 0.0 }
 0x404   :  { %v511_v4 = vsel %vm509_vm4, %v505_v2, 1.0 }
 0x405   :  { %1770 = vrcp.f32 %v511_v4 }
 0x406   :  { %v508_v5 = vpop.xlane.xlu1 %507 }
 0x407   :  { %vm510_vm5 = vcmp.gt.f32.partialorder %v508_v5, 0.0 }
 0x408   :  { %v512_v6 = vsel %vm510_vm5, %v508_v5, 1.0 }
 0x409   :  { %1772 = vrcp.f32 %v512_v6  ;;  %v1233_v6 = vld [vmem:[%s2381_s11 + $0x1] sm:$0x1] }
 0x40f   :  { %v1771_v8 = vpop.eup %1770 }
 0x410   :  { %v515_v10 = vmul.f32 %v1771_v8, %v2039_v24 }
 0x413   :  { %v1773_v9 = vpop.eup %1772 }
 0x414   :  { %v516_v12 = vmul.f32 %v1773_v9, %v2043_v26  ;;  %v931_v26 = vld [vmem:[%s2385_s15 + $0x8] sm:$0xff] }
 0x415   :  { %v1675_v30 = vpack.c.bf16 %v931_v26, %v930_v25 }
 0x416   :  { %v517_v13 = vpack.c.bf16 %v516_v12, %v515_v10  ;;  %v772_v10 = vstv %s1234_s12 }
 0x417   :  { %v773_v14 = vmul.f32 %v1243_v56, %v772_v10  ;;  %v774_v15 = vmul.f32 %v1244_v57, %v772_v10  ;;  %v920_v10 = vld [vmem:[%s2384_s14 + $0x30] sm:$0xff] }
 0x418   :  { %1465 = vmatmul.mubr.msk.bf16.vlgmr.msra.gmra.mrb[8].mxu0 %vm486_vm1, %v517_v13 }
 0x419   :  { %1492 = vmatprep.mubr.msk.f32.mxu0 %vm1798_vm0, %v1797_v27 }
 0x4eb   :  { %v563_v19 = vpop.f32.mrb[8].mxu0 }
 0x4ec   :  { %v564_v20 = vadd.f32 %v1205_v18, %v563_v19  ;;  %v1466_v21 = vpop.f32.mrb[9].mxu0 }
 0x4ed   :  { %v566_v22 = vpop.f32.mrb[10].mxu0 }
 0x4ee   :  { %v567_v23 = vadd.f32 %v1205_v18, %v566_v22  ;;  %v1467_v24 = vpop.f32.mrb[11].mxu0  ;;  %v570_v28 = vmax.f32 %v564_v20, 0.0 }
 0x4f0   :  { %v571_v29 = vmax.f32 %v567_v23, 0.0 }
 0x4f2   :  { %v572_v31 = vpack.c.bf16 %v571_v29, %v570_v28 }
 0x4f4   :  { %1485 = vmatmul.mubr.bf16.vlgmr.msra.gmra.mrb[4].mxu1 %v572_v31 }
 0x4f5   :  { %1676 = vmatpush3.bf16.msra.mxu1 %v1675_v30  ;;  %1539 = vmatprep.mubr.msk.f32.mxu1 %vm1798_vm0, %v1797_v27 }
 0x4f6   :  { %1677 = vmatprep.subr.bf16.mxu1 %v1799_v41 }
 0x4f9   :  { %1679 = vmatpush3.bf16.msra.mxu1 %v1678_v34 }
 0x4fa   :  { %1680 = vmatprep.subr.bf16.mxu1 %v1799_v41 }
 0x4fd   :  { %1682 = vmatpush3.bf16.msra.mxu1 %v1681_v37 }
 0x4fe   :  { %1683 = vmatprep.subr.bf16.mxu1 %v1799_v41 }
 0x501   :  { %1685 = vmatpush3.bf16.msra.mxu1 %v1684_v40 }
 0x502   :  { %1686 = vmatprep.subr.bf16.mxu1 %v1799_v41 }
 0x505   :  { %1688 = vmatpush3.bf16.msra.mxu1 %v1687_v44 }
 0x506   :  { %1689 = vmatprep.subr.bf16.mxu1 %v1799_v41 }
 0x509   :  { %1691 = vmatpush3.bf16.msra.mxu1 %v1690_v47 }
 0x50a   :  { %1692 = vmatprep.subr.bf16.mxu1 %v1799_v41 }
 0x50d   :  { %1694 = vmatpush3.bf16.msra.mxu1 %v1693_v50 }
 0x50e   :  { %1695 = vmatprep.subr.bf16.mxu1 %v1799_v41 }
 0x511   :  { %1697 = vmatpush3.bf16.msra.mxu1 %v1696_v59 }
 0x512   :  { %1722 = vmatprep.subr.bf16.mxu1 %v1799_v41 }
 0x514   :  { %1540 = vmatmul.mubr.f32.vlgmr.msra.gmra.mrb[2].mxu1 %v267_v60  ;;  %v914_v60 = vld [vmem:[%s2384_s14] sm:$0xff] }
 0x515   :  { %1609 = vmatprep.mubr.msk.f32.mxu1 %vm1798_vm0, %v1797_v27 }
 0x5c7   :  { %v672_v62 = vpop.f32.mrb[4].mxu1 }
 0x5c8   :  { %v1486_v63 = vpop.f32.mrb[5].mxu1  ;;  %v687_v0 = vmul.f32 %v1232_v61, %v672_v62 }
 0x5c9   :  { %v675_v1 = vpop.f32.mrb[6].mxu1  ;;  %v869_v63 = vld [vmem:[%s2375_s5] sm:$0xf] }
 0x5ca   :  { %v1672_v2 = vpack.c.bf16 %v675_v1, %v672_v62  ;;  %689 = vadd.xlane.f32.xlu0 %v687_v0  ;;  %v1487_v4 = vpop.f32.mrb[7].mxu1  ;;  %v688_v5 = vmul.f32 %v1232_v61, %v675_v1  ;;  %v915_v61 = vld [vmem:[%s2384_s14 + $0x8] sm:$0xff]  ;;  %v916_v1 = vld [vmem:[%s2384_s14 + $0x10] sm:$0xff] }
 0x5cb   :  { %v1699_v0 = vpack.c.bf16 %v915_v61, %v914_v60 }
 0x5cc   :  { %1673 = vmatpush3.bf16.xpose.msra.mxu0 %v1672_v2  ;;  %691 = vadd.xlane.f32.xlu1 %v688_v5  ;;  %v918_v5 = vld [vmem:[%s2384_s14 + $0x20] sm:$0xff] }
 0x5cd   :  { %1495 = vmatprep.subr.bf16.mxu0 %v1797_v27 }
 0x5d3   :  { %1493 = vmatmul.mubr.f32.vlgmr.msra.gmra.mrb[12].mxu0 %v1233_v6  ;;  %v919_v6 = vld [vmem:[%s2384_s14 + $0x28] sm:$0xff] }
 0x5d4   :  { %1496 = vmatpush3.bf16.msra.mxu0 %v1672_v2  ;;  %1497 = vmatprep.mubr.msk.bf16.mxu0 %vm1798_vm0, %v1797_v27  ;;  %v917_v2 = vld [vmem:[%s2384_s14 + $0x18] sm:$0xff] }
 0x5d5   :  { %1501 = vmatprep.subr.bf16.mxu0 %v1797_v27  ;;  %v1702_v4 = vpack.c.bf16 %v917_v2, %v916_v1 }
 0x5e7   :  { %v2221_v8 = vpop.f32.mrb[2].mxu1 }
 0x5e8   :  { %v1541_v9 = vpop.f32.mrb[3].mxu1 }
 0x5e9   :  { %v1705_v9 = vpack.c.bf16 %v919_v6, %v918_v5 }
 0x657   :  { %v690_v17 = vpop.xlane.xlu0 %689 }
 0x659   :  { %v692_v18 = vpop.xlane.xlu1 %691 }
 0x6a6   :  { %v761_v12 = vpop.f32.mrb[12].mxu0 }
 0x6a7   :  { %v768_v13 = vrot.slane %v761_v12, %v462_v55  ;;  %v1494_v16 = vpop.f32.mrb[13].mxu0 }
 0x6a8   :  { %v924_v16 = vld [vmem:[%s2384_s14 + $0x50] sm:$0xff] }
 0x6a9   :  { %v769_v19 = vadd.f32 %v768_v13, %v690_v17  ;;  %v770_v20 = vadd.f32 %v768_v13, %v692_v18  ;;  %v922_v13 = vld [vmem:[%s2384_s14 + $0x40] sm:$0xff]  ;;  %v925_v17 = vld [vmem:[%s2384_s14 + $0x58] sm:$0xff] }
 0x6aa   :  { %v1714_v18 = vpack.c.bf16 %v925_v17, %v924_v16 }
 0x6ab   :  { %v775_v21 = vadd.f32 %v773_v14, %v769_v19  ;;  %v776_v22 = vadd.f32 %v774_v15, %v770_v20  ;;  %v923_v14 = vld [vmem:[%s2384_s14 + $0x48] sm:$0xff]  ;;  %v926_v19 = vld [vmem:[%s2384_s14 + $0x60] sm:$0xff] }
 0x6ac   :  { %v1711_v15 = vpack.c.bf16 %v923_v14, %v922_v13  ;;  %v927_v20 = vld [vmem:[%s2384_s14 + $0x68] sm:$0xff] }
 0x6ad   :  { %v778_v23 = vmul.f32 0.2, %v776_v22  ;;  %v777_v24 = vmul.f32 0.2, %v775_v21 }
 0x6af   :  { %v780_v25 = vmax.f32 %v776_v22, %v778_v23  ;;  %v779_v26 = vmax.f32 %v775_v21, %v777_v24  ;;  %v1717_v21 = vpack.c.bf16 %v927_v20, %v926_v19  ;;  %v928_v22 = vld [vmem:[%s2384_s14 + $0x70] sm:$0xff]  ;;  %v929_v23 = vld [vmem:[%s2384_s14 + $0x78] sm:$0xff] }
 0x6b0   :  { %v1720_v24 = vpack.c.bf16 %v929_v23, %v928_v22 }
 0x6b1   :  { %v782_v52 = vadd.f32 %v1248_v11, %v780_v25  ;;  %v781_v55 = vadd.f32 %v1247_v7, %v779_v26  ;;  %v1095_v25 = vld [vmem:[%s2387_s17] sm:$0xff]  ;;  %v1096_v26 = vld [vmem:[%s2387_s17 + $0x8] sm:$0xff] }
 0x6b3   :  { %v786_v53 = vsel %vm486_vm1, %v782_v52, -inf  ;;  %v783_v56 = vsel %vm486_vm1, %v781_v55, -inf }
 0x6b4   :  { %787 = vmax.xlane.f32.xlu1 %v786_v53  ;;  %784 = vmax.xlane.f32.xlu0 %v783_v56  ;;  %v1098_v53 = vld [vmem:[%s2387_s17 + $0x18] sm:$0xff] }
 0x741   :  { %v788_v57 = vpop.xlane.xlu1 %787  ;;  %v785_v28 = vpop.xlane.xlu0 %784 }
 0x742   :  { %vm790_vm6 = vcmp.gt.f32.partialorder %v788_v57, -5e+29  ;;  %vm789_vm7 = vcmp.gt.f32.partialorder %v785_v28, -5e+29 }
 0x743   :  { %v792_v29 = vsel %vm790_vm6, %v788_v57, 0.0  ;;  %v791_v30 = vsel %vm789_vm7, %v785_v28, 0.0  ;;  %v1099_v57 = vld [vmem:[%s2387_s17 + $0x20] sm:$0xff]  ;;  %v1100_v28 = vld [vmem:[%s2387_s17 + $0x28] sm:$0xff] }
 0x744   :  { %v794_v31 = vsub.f32 %v782_v52, %v792_v29  ;;  %v793_v32 = vsub.f32 %v781_v55, %v791_v30  ;;  %v1097_v52 = vld [vmem:[%s2387_s17 + $0x10] sm:$0xff]  ;;  %v1723_v55 = vpack.c.bf16 %v1096_v26, %v1095_v25  ;;  %v1729_v29 = vpack.c.bf16 %v1100_v28, %v1099_v57 }
 0x745   :  { %v1726_v56 = vpack.c.bf16 %v1098_v53, %v1097_v52  ;;  %v1101_v30 = vld [vmem:[%s2387_s17 + $0x30] sm:$0xff] }
 0x746   :  { %v797_v33 = vmul.f32 1.442695, %v794_v31  ;;  %v795_v34 = vmul.f32 1.442695, %v793_v32  ;;  %1724 = vmatpush3.bf16.msra.mxu1 %v1723_v55  ;;  %v1102_v31 = vld [vmem:[%s2387_s17 + $0x38] sm:$0xff] }
 0x747   :  { %1725 = vmatprep.subr.bf16.mxu1 %v1799_v41  ;;  %v1732_v32 = vpack.c.bf16 %v1102_v31, %v1101_v30 }
 0x748   :  { %1774 = vpow2.f32 %v797_v33  ;;  %v1103_v33 = vld [vmem:[%s2387_s17 + $0x40] sm:$0xff] }
 0x749   :  { %1776 = vpow2.f32 %v795_v34  ;;  %v1104_v34 = vld [vmem:[%s2387_s17 + $0x48] sm:$0xff] }
 0x74a   :  { %1727 = vmatpush3.bf16.msra.mxu1 %v1726_v56 }
 0x74b   :  { %1728 = vmatprep.subr.bf16.mxu1 %v1799_v41 }
 0x74e   :  { %1730 = vmatpush3.bf16.msra.mxu1 %v1729_v29 }
 0x74f   :  { %1731 = vmatprep.subr.bf16.mxu1 %v1799_v41 }
 0x752   :  { %v1775_v3 = vpop.eup %1774  ;;  %1733 = vmatpush3.bf16.msra.mxu1 %v1732_v32 }
 0x753   :  { %v1777_v7 = vpop.eup %1776  ;;  %v802_v11 = vsel %vm486_vm1, %v1775_v3, 0.0  ;;  %1734 = vmatprep.subr.bf16.mxu1 %v1799_v41 }
 0x754   :  { %803 = vadd.xlane.f32.xlu1 %v802_v11  ;;  %v799_v35 = vsel %vm486_vm1, %v1777_v7, 0.0  ;;  %v1106_v11 = vld [vmem:[%s2387_s17 + $0x58] sm:$0xff] }
 0x755   :  { %800 = vadd.xlane.f32.xlu0 %v799_v35 }
 0x7e1   :  { %v804_v36 = vpop.xlane.xlu1 %803 }
 0x7e2   :  { %vm806_vm8 = vcmp.gt.f32.partialorder %v804_v36, 0.0  ;;  %v801_v37 = vpop.xlane.xlu0 %800 }
 0x7e3   :  { %v808_v38 = vsel %vm806_vm8, %v804_v36, 1.0  ;;  %vm805_vm9 = vcmp.gt.f32.partialorder %v801_v37, 0.0 }
 0x7e4   :  { %1778 = vrcp.f32 %v808_v38  ;;  %v807_v39 = vsel %vm805_vm9, %v801_v37, 1.0 }
 0x7e5   :  { %1780 = vrcp.f32 %v807_v39 }
 0x7ee   :  { %v1779_v40 = vpop.eup %1778 }
 0x7ef   :  { %v1781_v42 = vpop.eup %1780  ;;  %v812_v43 = vmul.f32 %v1779_v40, %v1775_v3  ;;  %v1735_v3 = vpack.c.bf16 %v1104_v34, %v1103_v33  ;;  %v1107_v40 = vld [vmem:[%s2387_s17 + $0x60] sm:$0xff] }
 0x7f0   :  { %v811_v44 = vmul.f32 %v1781_v42, %v1777_v7  ;;  %v1105_v7 = vld [vmem:[%s2387_s17 + $0x50] sm:$0xff]  ;;  %v1108_v42 = vld [vmem:[%s2387_s17 + $0x68] sm:$0xff] }
 0x7f1   :  { %1736 = vmatpush3.bf16.msra.mxu1 %v1735_v3  ;;  %v1738_v35 = vpack.c.bf16 %v1106_v11, %v1105_v7 }
 0x7f2   :  { %v813_v45 = vpack.c.bf16 %v812_v43, %v811_v44  ;;  %1737 = vmatprep.subr.bf16.mxu1 %v1799_v41  ;;  %v1741_v43 = vpack.c.bf16 %v1108_v42, %v1107_v40  ;;  %v1109_v44 = vld [vmem:[%s2387_s17 + $0x70] sm:$0xff] }
 0x7f4   :  { %1498 = vmatmul.mubr.msk.bf16.vlgmr.msra.gmra.mrb[16].mxu0 %vm486_vm1, %v813_v45  ;;  %v1110_v45 = vld [vmem:[%s2387_s17 + $0x78] sm:$0xff] }
 0x7f5   :  { %1503 = vmatprep.mubr.msk.bf16.mxu0 %vm1798_vm0, %v1797_v27  ;;  %1739 = vmatpush3.bf16.msra.mxu1 %v1738_v35 }
 0x7f6   :  { %1740 = vmatprep.subr.bf16.mxu1 %v1799_v41 }
 0x7f9   :  { %1742 = vmatpush3.bf16.msra.mxu1 %v1741_v43 }
 0x7fa   :  { %1743 = vmatprep.subr.bf16.mxu1 %v1799_v41 }
 0x8c7   :  { %v860_v47 = vpop.f32.mrb[16].mxu0 }
 0x8c8   :  { %v861_v48 = vadd.f32 %v1236_v46, %v860_v47  ;;  %v1499_v49 = vpop.f32.mrb[17].mxu0 }
 0x8c9   :  { %v863_v50 = vpop.f32.mrb[18].mxu0 }
 0x8ca   :  { %v864_v51 = vadd.f32 %v1236_v46, %v863_v50  ;;  %v1500_v54 = vpop.f32.mrb[19].mxu0  ;;  %v867_v58 = vmax.f32 %v861_v48, 0.0  ;;  %v1744_v46 = vpack.c.bf16 %v1110_v45, %v1109_v44  ;;  %v1239_v48 = vld [vmem:[%s2386_s16] ss:$0 sm:$0xff] }
 0x8cb   :  { %v1240_v54 = vld [vmem:[%s2388_s18] ss:$0 sm:$0xff] }
 0x8cc   :  { %v868_v59 = vmax.f32 %v864_v51, 0.0  ;;  %1745 = vmatpush3.bf16.msra.mxu1 %v1744_v46 }
 0x8ce   :  { %v870_v62 = vpack.c.bf16 %v868_v59, %v867_v58 }
 0x8d0   :  { %1502 = vmatpush3.bf16.msra.mxu0 %v870_v62 }
 0x8d1   :  { %1698 = vmatprep.subr.bf16.mxu0 %v1799_v41 }
 0x8d3   :  { %1504 = vmatmul.mubr.msk.bf16.vlgmr.msra.gmra.mrb[20].mxu0 %vm486_vm1, %v869_v63 }
 0x8d4   :  { %1700 = vmatpush3.bf16.msra.mxu0 %v1699_v0  ;;  %1574 = vmatprep.mubr.msk.f32.mxu0 %vm1798_vm0, %v1797_v27  ;;  %v921_v27 = vld [vmem:[%s2384_s14 + $0x38] sm:$0xff] }
 0x8d5   :  { %1701 = vmatprep.subr.bf16.mxu0 %v1799_v41  ;;  %v1708_v12 = vpack.c.bf16 %v921_v27, %v920_v10 }
 0x8d8   :  { %1703 = vmatpush3.bf16.msra.mxu0 %v1702_v4 }
 0x8d9   :  { %1704 = vmatprep.subr.bf16.mxu0 %v1799_v41 }
 0x8dc   :  { %1706 = vmatpush3.bf16.msra.mxu0 %v1705_v9 }
 0x8dd   :  { %1707 = vmatprep.subr.bf16.mxu0 %v1799_v41 }
 0x8e0   :  { %1709 = vmatpush3.bf16.msra.mxu0 %v1708_v12 }
 0x8e1   :  { %1710 = vmatprep.subr.bf16.mxu0 %v1799_v41 }
 0x8e4   :  { %1712 = vmatpush3.bf16.msra.mxu0 %v1711_v15 }
 0x8e5   :  { %1713 = vmatprep.subr.bf16.mxu0 %v1799_v41 }
 0x8e8   :  { %1715 = vmatpush3.bf16.msra.mxu0 %v1714_v18 }
 0x8e9   :  { %1716 = vmatprep.subr.bf16.mxu0 %v1799_v41 }
 0x8ec   :  { %1718 = vmatpush3.bf16.msra.mxu0 %v1717_v21 }
 0x8ed   :  { %1719 = vmatprep.subr.bf16.mxu0 %v1799_v41 }
 0x8f0   :  { %1721 = vmatpush3.bf16.msra.mxu0 %v1720_v24 }
 0x9a6   :  { %v908_v36 = vpop.f32.mrb[20].mxu0 }
 0x9a7   :  { %1575 = vmatmul.mubr.f32.vlgmr.msra.gmra.mrb[14].mxu0 %v908_v36  ;;  %v1505_v37 = vpop.f32.mrb[21].mxu0 }
 0x9a8   :  { %v911_v38 = vpop.f32.mrb[22].mxu0 }
 0x9a9   :  { %v1506_v39 = vpop.f32.mrb[23].mxu0 }
 0xa7a   :  { %v1082_v47 = vpop.f32.mrb[14].mxu0 }
 0xa7b   :  { %v1083_v49 = vadd.f32 %v1082_v47, %v2221_v8  ;;  %v1576_v50 = vpop.f32.mrb[15].mxu0 }
 0xa7d   :  { %v1093_v51 = vadd.f32 %v1239_v48, %v1083_v49 }
 0xa7f   :  { %v1094_v41 = vmax.f32 %v1093_v51, 0.0 }
 0xa81   :  { %1610 = vmatmul.mubr.f32.vlgmr.msra.gmra.mrb[8].mxu1 %v1094_v41 }
 0xb54   :  { %v1184_v58 = vpop.f32.mrb[8].mxu1 }
 0xb55   :  { %v1185_v59 = vadd.f32 %v1240_v54, %v1184_v58  ;;  %v1611_v60 = vpop.f32.mrb[9].mxu1 }
 0xb57   :  { %1188 = vst [vmem:[%s2389_s19] sm:$0xff] %v1185_v59 }
 0xb58   :  { %1193 = vsyncpa [#allocation3], 1 }

</bundles_post_ra>
